<compile_context>
chip_gen: v6e
topology: v6e:2x2x1
jax: 0.10.0
libtpu: 0.0.40
codegen_flags: <defaults>
</compile_context>

<pallas_src>
import functools

import jax
import jax.numpy as jnp
from jax.experimental import pallas as pl
from jax.experimental.pallas import tpu as pltpu


def _round_up(x, m):
    return ((x + m - 1) // m) * m


def _spat_hatcl_kernel(f1_hbm, f2_ref, out_ref, acc_ref, a_scaled_ref, dma_sem,
                       *, temperature, n_valid, n_pad, block_n, lane_chunk,
                       norm_chunk, num_inner):
    oi = pl.program_id(0)          # outer ("parallel") super-block of E-columns
    ii = pl.program_id(1)          # inner ("arbitrary") column block within it

    eps_sq = jnp.float32(1e-24)                  # (F.normalize eps = 1e-12)^2
    inv_temp = jnp.float32(1.0 / temperature)
    pad_rows = jnp.float32(n_pad - n_valid)      # zero-padded rows of `a`

    # ---- once per outer block (== once per TensorCore on v7x) --------------
    # features (HBM) --DMA--> a_scaled scratch, normalized in place with
    # 1/temperature folded in; row-chunked so temp VMEM stays bounded.
    @pl.when(ii == 0)
    def _init():
        cp = pltpu.make_async_copy(f1_hbm, a_scaled_ref, dma_sem.at[0])
        cp.start()
        cp.wait()
        # NOTE: if profiles show this prologue exposed it can be overlapped
        # with the first column block; left serial for simplicity.

        def norm_body(c, carry):
            r0 = pl.multiple_of(c * norm_chunk, norm_chunk)
            blk = a_scaled_ref[pl.ds(r0, norm_chunk), :]
            inv_n = jax.lax.rsqrt(
                jnp.maximum(jnp.sum(blk * blk, axis=-1, keepdims=True), eps_sq))
            a_scaled_ref[pl.ds(r0, norm_chunk), :] = blk * (inv_n * inv_temp)
            return carry

        jax.lax.fori_loop(0, n_pad // norm_chunk, norm_body, 0)
        acc_ref[0] = jnp.float32(0.0)

    # ---- normalize this block of features2 (columns j of E) ----------------
    f2 = f2_ref[...].astype(jnp.float32)                         # (tn, D)
    inv_n2 = jax.lax.rsqrt(
        jnp.maximum(jnp.sum(f2 * f2, axis=-1, keepdims=True), eps_sq))
    b = f2 * inv_n2                                              # (tn, D)

    # ---- chunked column sums: sum_i exp(a_i . b_j / T) ----------------------
    def col_body(c, col_sum):
        k0 = pl.multiple_of(c * lane_chunk, lane_chunk)
        a_chunk = a_scaled_ref[pl.ds(k0, lane_chunk), :]         # (chunk, D)
        s = jax.lax.dot_general(                                 # (tn, chunk)
            b, a_chunk, dimension_numbers=(((1,), (1,)), ((), ())),
            preferred_element_type=jnp.float32)
        return col_sum + jnp.sum(jnp.exp(s), axis=-1, keepdims=True)

    col_sum = jax.lax.fori_loop(0, n_pad // lane_chunk, col_body,
                                jnp.zeros((block_n, 1), jnp.float32))

    # ---- numerator: row-wise dot against the matching rows of a_scaled -----
    row0 = pl.multiple_of((oi * num_inner + ii) * block_n, block_n)
    a_blk = a_scaled_ref[pl.ds(row0, block_n), :]                # (tn, D)
    log_num = jnp.sum(b * a_blk, axis=-1, keepdims=True)         # = s_jj / T
    # Zero-padded `a` rows contribute exp(0) = 1 to every column sum.
    denom = col_sum - jnp.exp(log_num) - pad_rows                # (tn, 1)

    # ---- mask padded rows of features2, accumulate into this outer block ---
    rows = row0 + jax.lax.broadcasted_iota(jnp.int32, (block_n, 1), 0)
    terms = jnp.where(rows < n_valid, log_num - jnp.log(denom),
                      jnp.float32(0.0))
    acc_ref[0] = acc_ref[0] + jnp.sum(terms)

    # ---- flush this outer block's partial sum (lane-dense full-tile store) --
    @pl.when(ii == pl.num_programs(1) - 1)
    def _flush():
        out_ref[...] = jnp.full(out_ref.shape, acc_ref[0], dtype=jnp.float32)


def spat_hatcl_loss(features, features2, temperature=0.5, *,
                    block_n=None, lane_chunk=None, num_outer=None):
    """features, features2: (N, D) arrays. Returns the scalar loss (float32)."""
    assert features.shape == features2.shape and features.ndim == 2
    n, d = features.shape

    f1 = features.astype(jnp.float32)
    f2 = features2.astype(jnp.float32)
    # TODO(synk): optional bf16 a_scaled / bf16-exp path (v6e/v7x only) not
    # adopted; it needs per-size validation against the f32 reference.

    # ---- tile sizes (block_n multiple of 8; 256 keeps the MXU M-dim full) ---
    if block_n is None:
        block_n = min(256, _round_up(n, 8))
    block_n = max(8, _round_up(block_n, 8))
    if num_outer is None:
        num_outer = 2 if n > block_n else 1     # lets v7x's 2nd core take half
    num_outer = max(1, int(num_outer))

    n_pad = _round_up(n, block_n * num_outer)
    num_inner = n_pad // (block_n * num_outer)

    if lane_chunk is None:
        lane_chunk = min(n_pad, 512)
    lane_chunk = max(8, (min(lane_chunk, n_pad) // 8) * 8)
    while n_pad % lane_chunk:                   # must divide n_pad (8 always does)
        lane_chunk -= 8
    norm_chunk = block_n                        # divides n_pad by construction

    pad = n_pad - n
    if pad:
        f1 = jnp.pad(f1, ((0, pad), (0, 0)))
        f2 = jnp.pad(f2, ((0, pad), (0, 0)))

    # ---- VMEM budget: a_scaled + f2 double-buffer + chunked temporaries -----
    est = (n_pad * d * 4                    # a_scaled scratch
           + 2 * block_n * d * 4            # features2 double-buffer
           + 3 * block_n * lane_chunk * 4   # score / exp chunk temporaries
           + (2 << 20))
    vmem_limit = int(min(max(int(est * 1.5), 32 << 20), 56 << 20))

    kernel = functools.partial(
        _spat_hatcl_kernel, temperature=temperature, n_valid=n, n_pad=n_pad,
        block_n=block_n, lane_chunk=lane_chunk, norm_chunk=norm_chunk,
        num_inner=num_inner)

    partials = pl.pallas_call(
        kernel,
        out_shape=jax.ShapeDtypeStruct((num_outer, 8, 128), jnp.float32),
        grid_spec=pltpu.PrefetchScalarGridSpec(
            num_scalar_prefetch=0,
            grid=(num_outer, num_inner),
            in_specs=[
                # features: raw HBM ref, manually copied once per outer block.
                pl.BlockSpec(memory_space=pl.ANY),
                # features2: one column block of E per grid step.
                pl.BlockSpec((block_n, d),
                             lambda oi, ii: (oi * num_inner + ii, 0)),
            ],
            # Per-outer-block partial sums, lane-dense (8, 128) tiles.
            out_specs=pl.BlockSpec((1, 8, 128), lambda oi, ii: (oi, 0, 0)),
            scratch_shapes=[
                pltpu.SMEM((1,), jnp.float32),          # per-block accumulator
                pltpu.VMEM((n_pad, d), jnp.float32),    # a / temperature
                pltpu.SemaphoreType.DMA((1,)),          # features -> scratch
            ],
        ),
        compiler_params=pltpu.CompilerParams(
            dimension_semantics=("parallel", "arbitrary"),
            vmem_limit_bytes=vmem_limit),
    )(f1, f2)

    # Final reduction over the per-outer partials in f32, then negate / mean.
    return -(jnp.sum(partials[:, 0, 0]) / jnp.float32(n))


def _reference(features, features2, temperature=0.5):
    # Pure-JAX reference mirroring the PyTorch module literally.
    eps = 1e-12
    a = features / jnp.maximum(
        jnp.linalg.norm(features, axis=-1, keepdims=True), eps)
    b = features2 / jnp.maximum(
        jnp.linalg.norm(features2, axis=-1, keepdims=True), eps)
    e = jnp.exp((a @ b.T) / temperature)
    diag = jnp.diagonal(e)
    denom = jnp.sum(e, axis=0) - diag
    return -jnp.mean(jnp.log(diag / denom))


if __name__ == "__main__":
    key = jax.random.PRNGKey(0)
    k1, k2 = jax.random.split(key)
    N, D = 60, 32          # N deliberately NOT a multiple of the block size
    features = jax.random.normal(k1, (N, D), dtype=jnp.float32)
    features2 = jax.random.normal(k2, (N, D), dtype=jnp.float32)

    ref = _reference(features, features2, temperature=0.5)

    # Fully tiled path: 2 "parallel" outer blocks x 2 inner blocks of 16 rows,
    # 2 lane chunks per column sum, 4 zero-padded (masked) rows.
    loss = spat_hatcl_loss(features, features2, temperature=0.5,
                           block_n=16, lane_chunk=32, num_outer=2)
    jax.block_until_ready(loss)
    assert jnp.allclose(loss, ref, rtol=1e-4, atol=1e-4), (loss, ref)

    # Default auto-tiling path (single outer block, single column block).
    loss2 = spat_hatcl_loss(features, features2, temperature=0.5)
    jax.block_until_ready(loss2)
    assert jnp.allclose(loss2, ref, rtol=1e-4, atol=1e-4), (loss2, ref)

    print("KERNEL_OK")
</pallas_src>

<mosaic_0001>
module attributes {stable_mosaic.version = 11 : i64} {
  func.func @_spat_hatcl_kernel(%arg0: i32, %arg1: i32, %arg2: memref<64x32xf32, #tpu.memory_space<any>>, %arg3: memref<16x32xf32, #tpu.memory_space<vmem>>, %arg4: memref<1x8x128xf32, #tpu.memory_space<vmem>>, %arg5: memref<1xf32, #tpu.memory_space<smem>>, %arg6: memref<64x32xf32, #tpu.memory_space<vmem>>, %arg7: memref<1x!tpu.dma_semaphore, #tpu.memory_space<semaphore_mem>>) attributes {dimension_semantics = [#tpu.dimension_semantics<parallel>, #tpu.dimension_semantics<arbitrary>], iteration_bounds = array<i64: 2, 2>, scalar_prefetch = 0 : i64, scratch_operands = 3 : i64, tpu.core_type = #tpu.core_type<tc>, window_params = [{}, {transform_indices = @transform_1, window_bounds = array<i64: 16, 32>}, {transform_indices = @transform_2, window_bounds = array<i64: 1, 8, 128>}]} {
    %c0_i32 = arith.constant 0 : i32
    %0 = arith.cmpi eq, %arg1, %c0_i32 : i32
    %1 = arith.extui %0 : i1 to i32
    %cst = arith.constant 1.000000e-24 : f32
    %cst_0 = arith.constant 2.000000e+00 : f32
    %c0_i32_1 = arith.constant 0 : i32
    %2 = arith.cmpi ne, %1, %c0_i32_1 : i32
    scf.if %2 {
      %c0_i32_18 = arith.constant 0 : i32
      %47 = tpu.memref_slice %arg7[%c0_i32_18] : memref<1x!tpu.dma_semaphore, #tpu.memory_space<semaphore_mem>> -> memref<1x!tpu.dma_semaphore, #tpu.memory_space<semaphore_mem>>
      %48 = tpu.memref_squeeze %47 : memref<1x!tpu.dma_semaphore, #tpu.memory_space<semaphore_mem>> -> memref<!tpu.dma_semaphore, #tpu.memory_space<semaphore_mem>>
      tpu.enqueue_dma source(%arg2 : memref<64x32xf32, #tpu.memory_space<any>>) target(%arg6 : memref<64x32xf32, #tpu.memory_space<vmem>>) target_semaphore(%48 : memref<!tpu.dma_semaphore, #tpu.memory_space<semaphore_mem>>)
      %c0_i32_19 = arith.constant 0 : i32
      %49 = tpu.memref_slice %arg7[%c0_i32_19] : memref<1x!tpu.dma_semaphore, #tpu.memory_space<semaphore_mem>> -> memref<1x!tpu.dma_semaphore, #tpu.memory_space<semaphore_mem>>
      %50 = tpu.memref_squeeze %49 : memref<1x!tpu.dma_semaphore, #tpu.memory_space<semaphore_mem>> -> memref<!tpu.dma_semaphore, #tpu.memory_space<semaphore_mem>>
      tpu.wait_dma2 semaphore(%50 : memref<!tpu.dma_semaphore, #tpu.memory_space<semaphore_mem>>) src(%arg2 : memref<64x32xf32, #tpu.memory_space<any>>) dst(%arg6 : memref<64x32xf32, #tpu.memory_space<vmem>>)
      %c0_i32_20 = arith.constant 0 : i32
      %c4_i32 = arith.constant 4 : i32
      %51 = arith.addi %c0_i32_20, %c4_i32 : i32
      %c1_i32_21 = arith.constant 1 : i32
      scf.for %arg8 = %c0_i32_20 to %51 step %c1_i32_21  : i32 {
        %c16_i32_25 = arith.constant 16 : i32
        %53 = arith.muli %arg8, %c16_i32_25 : i32
        %54 = tpu.assume_multiple %53, 16 : i32
        %55 = arith.index_cast %54 : i32 to index
        %c0_26 = arith.constant 0 : index
        %56 = vector.load %arg6[%55, %c0_26] : memref<64x32xf32, #tpu.memory_space<vmem>>, vector<16x32xf32>
        %57 = arith.mulf %56, %56 : vector<16x32xf32>
        %cst_27 = arith.constant dense<0.000000e+00> : vector<16xf32>
        %58 = vector.multi_reduction <add>, %57, %cst_27 [1] : vector<16x32xf32> to vector<16xf32>
        %59 = vector.shape_cast %58 : vector<16xf32> to vector<16x1xf32>
        %60 = vector.broadcast %cst : f32 to vector<16x1xf32>
        %61 = arith.maximumf %59, %60 : vector<16x1xf32>
        %62 = math.rsqrt %61 : vector<16x1xf32>
        %63 = vector.broadcast %cst_0 : f32 to vector<16x1xf32>
        %64 = arith.mulf %62, %63 : vector<16x1xf32>
        %65 = vector.broadcast %64 : vector<16x1xf32> to vector<16x32xf32>
        %66 = arith.mulf %56, %65 : vector<16x32xf32>
        %67 = arith.index_cast %54 : i32 to index
        %c0_28 = arith.constant 0 : index
        %68 = vector.load %arg6[%67, %c0_28] : memref<64x32xf32, #tpu.memory_space<vmem>>, vector<16x32xf32>
        tpu.vector_store %arg6[%67, %c0_28], %66 {strides = array<i32>} : memref<64x32xf32, #tpu.memory_space<vmem>>, vector<16x32xf32>,
      }
      %c4_i32_22 = arith.constant 4 : i32
      %cst_23 = arith.constant 0.000000e+00 : f32
      %c0_24 = arith.constant 0 : index
      %52 = memref.load %arg5[%c0_24] : memref<1xf32, #tpu.memory_space<smem>>
      memref.store %cst_23, %arg5[%c0_24] : memref<1xf32, #tpu.memory_space<smem>>
    } else {
    }
    %c0 = arith.constant 0 : index
    %c0_2 = arith.constant 0 : index
    %3 = vector.load %arg3[%c0, %c0_2] : memref<16x32xf32, #tpu.memory_space<vmem>>, vector<16x32xf32>
    %4 = arith.mulf %3, %3 : vector<16x32xf32>
    %cst_3 = arith.constant dense<0.000000e+00> : vector<16xf32>
    %5 = vector.multi_reduction <add>, %4, %cst_3 [1] : vector<16x32xf32> to vector<16xf32>
    %6 = vector.shape_cast %5 : vector<16xf32> to vector<16x1xf32>
    %cst_4 = arith.constant 1.000000e-24 : f32
    %7 = vector.broadcast %cst_4 : f32 to vector<16x1xf32>
    %8 = arith.maximumf %6, %7 : vector<16x1xf32>
    %9 = math.rsqrt %8 : vector<16x1xf32>
    %10 = vector.broadcast %9 : vector<16x1xf32> to vector<16x32xf32>
    %11 = arith.mulf %3, %10 : vector<16x32xf32>
    %cst_5 = arith.constant 0.000000e+00 : f32
    %12 = vector.broadcast %cst_5 : f32 to vector<16x1xf32>
    %c0_i32_6 = arith.constant 0 : i32
    %c2_i32 = arith.constant 2 : i32
    %13 = arith.addi %c0_i32_6, %c2_i32 : i32
    %c1_i32 = arith.constant 1 : i32
    %14 = scf.for %arg8 = %c0_i32_6 to %13 step %c1_i32 iter_args(%arg9 = %12) -> (vector<16x1xf32>)  : i32 {
      %c32_i32 = arith.constant 32 : i32
      %47 = arith.muli %arg8, %c32_i32 : i32
      %48 = tpu.assume_multiple %47, 32 : i32
      %49 = arith.index_cast %48 : i32 to index
      %c0_18 = arith.constant 0 : index
      %50 = vector.load %arg6[%49, %c0_18] : memref<64x32xf32, #tpu.memory_space<vmem>>, vector<32x32xf32>
      %cst_19 = arith.constant dense<0.000000e+00> : vector<16x32xf32>
      %51 = tpu.matmul %11, %50, %cst_19 {dimension_numbers = #tpu.dot_dimension_numbers<[1], [1], [0], [0], [0, 0, 1, 0], [], []>} : vector<16x32xf32>, vector<32x32xf32>, vector<16x32xf32> -> vector<16x32xf32>
      %52 = math.exp %51 : vector<16x32xf32>
      %cst_20 = arith.constant dense<0.000000e+00> : vector<16xf32>
      %53 = vector.multi_reduction <add>, %52, %cst_20 [1] : vector<16x32xf32> to vector<16xf32>
      %54 = vector.shape_cast %53 : vector<16xf32> to vector<16x1xf32>
      %55 = arith.addf %arg9, %54 : vector<16x1xf32>
      scf.yield %55 : vector<16x1xf32>
    }
    %c2_i32_7 = arith.constant 2 : i32
    %c2_i32_8 = arith.constant 2 : i32
    %15 = arith.muli %arg0, %c2_i32_8 : i32
    %16 = arith.addi %15, %arg1 : i32
    %c16_i32 = arith.constant 16 : i32
    %17 = arith.muli %16, %c16_i32 : i32
    %18 = tpu.assume_multiple %17, 16 : i32
    %19 = arith.index_cast %18 : i32 to index
    %c0_9 = arith.constant 0 : index
    %20 = vector.load %arg6[%19, %c0_9] : memref<64x32xf32, #tpu.memory_space<vmem>>, vector<16x32xf32>
    %21 = arith.mulf %11, %20 : vector<16x32xf32>
    %cst_10 = arith.constant dense<0.000000e+00> : vector<16xf32>
    %22 = vector.multi_reduction <add>, %21, %cst_10 [1] : vector<16x32xf32> to vector<16xf32>
    %23 = vector.shape_cast %22 : vector<16xf32> to vector<16x1xf32>
    %24 = math.exp %23 : vector<16x1xf32>
    %25 = arith.subf %14, %24 : vector<16x1xf32>
    %cst_11 = arith.constant 4.000000e+00 : f32
    %26 = vector.broadcast %cst_11 : f32 to vector<16x1xf32>
    %27 = arith.subf %25, %26 : vector<16x1xf32>
    %28 = tpu.iota {dimensions = array<i32: 0>} : vector<16x1xi32>
    %29 = vector.broadcast %18 : i32 to vector<16x1xi32>
    %30 = arith.addi %29, %28 : vector<16x1xi32>
    %c60_i32 = arith.constant 60 : i32
    %31 = vector.broadcast %c60_i32 : i32 to vector<16x1xi32>
    %32 = arith.cmpi slt, %30, %31 : vector<16x1xi32>
    %33 = math.log %27 : vector<16x1xf32>
    %34 = arith.subf %23, %33 : vector<16x1xf32>
    %cst_12 = arith.constant 0.000000e+00 : f32
    %35 = vector.broadcast %cst_12 : f32 to vector<16x1xf32>
    %36 = arith.select %32, %34, %35 : vector<16x1xi1>, vector<16x1xf32>
    %c0_13 = arith.constant 0 : index
    %37 = memref.load %arg5[%c0_13] : memref<1xf32, #tpu.memory_space<smem>>
    %38 = vector.shape_cast %36 : vector<16x1xf32> to vector<1x16x1xf32>
    %cst_14 = arith.constant dense<0.000000e+00> : vector<1xf32>
    %39 = vector.multi_reduction <add>, %38, %cst_14 [1, 2] : vector<1x16x1xf32> to vector<1xf32>
    %40 = vector.shape_cast %39 : vector<1xf32> to vector<1x1x1xf32>
    %41 = vector.extract %40[0, 0, 0] : f32 from vector<1x1x1xf32>
    %42 = arith.addf %37, %41 : f32
    %c0_15 = arith.constant 0 : index
    %43 = memref.load %arg5[%c0_15] : memref<1xf32, #tpu.memory_space<smem>>
    memref.store %42, %arg5[%c0_15] : memref<1xf32, #tpu.memory_space<smem>>
    %c1_i32_16 = arith.constant 1 : i32
    %44 = arith.cmpi eq, %arg1, %c1_i32_16 : i32
    %45 = arith.extui %44 : i1 to i32
    %c0_i32_17 = arith.constant 0 : i32
    %46 = arith.cmpi ne, %45, %c0_i32_17 : i32
    scf.if %46 {
      %c0_18 = arith.constant 0 : index
      %47 = memref.load %arg5[%c0_18] : memref<1xf32, #tpu.memory_space<smem>>
      %48 = vector.broadcast %47 : f32 to vector<1x8x128xf32>
      %c0_19 = arith.constant 0 : index
      %c0_20 = arith.constant 0 : index
      %c0_21 = arith.constant 0 : index
      %49 = vector.load %arg4[%c0_19, %c0_20, %c0_21] : memref<1x8x128xf32, #tpu.memory_space<vmem>>, vector<1x8x128xf32>
      tpu.vector_store %arg4[%c0_19, %c0_20, %c0_21], %48 {strides = array<i32>} : memref<1x8x128xf32, #tpu.memory_space<vmem>>, vector<1x8x128xf32>,
    } else {
    }
    return
  }
  func.func @transform_1(%arg0: i32, %arg1: i32) -> (i32, i32) {
    %c2_i32 = arith.constant 2 : i32
    %0 = arith.muli %arg0, %c2_i32 : i32
    %1 = arith.addi %0, %arg1 : i32
    %c0_i32 = arith.constant 0 : i32
    %c0_i32_0 = arith.constant 0 : i32
    return %1, %c0_i32 : i32, i32
  }
  func.func @transform_2(%arg0: i32, %arg1: i32) -> (i32, i32, i32) {
    %c0_i32 = arith.constant 0 : i32
    %c0_i32_0 = arith.constant 0 : i32
    %c0_i32_1 = arith.constant 0 : i32
    return %arg0, %c0_i32, %c0_i32_0 : i32, i32, i32
  }
}

</mosaic_0001>

<bundles_post_ra>
// kernel: tpu_custom_call.1
= control target key start
LH: loop header
LB: loop body
LE: loop exit
PB: predicated region body
PF: predicated region fallthrough
CT: control target
= control target key end

     0   :  { %7 = vsyncpa [#allocation6], 0  ;;  %s1075_s0 = inlined_call_operand.vmem [shape: f32[64,32], index: 0, kind: input, shape index: {}]   ;;  %s1076_s1 = inlined_call_operand.vmem [shape: f32[64,32], index: 1, kind: input, shape index: {}]   ;;  %s1077_s2 = inlined_call_operand.hbm [shape: f32[2,8,128], index: 2, kind: output, shape index: {}]  }
   0x1   :  { %9 = vsyncpa [#allocation6 + $0x1], 0  ;;  %s877_s9 = smov 0   ;;  %s879_s10 = smov 0  }
   0x2   :  { %s881_s11 = smov 0   ;;  %s883_s12 = smov 0  }
   0x3   :  { %s885_s13 = smov 0   ;;  %s887_s14 = smov 0  }
   0x4   :  { %s889_s15 = smov 0   ;;  %s891_s16 = smov 0  }
   0x5 LB: > { %s559_s17 = sadd.s32 4294967295, %s842_s16   ;;  %s560_s18 = sadd.s32 4294967294, %s842_s16   ;;  %s842_s16 = sphi %s891_s16, %s15_s16   ;;  %s838_s15 = sphi %s889_s15, %s1086_s15   ;;  %s834_s14 = sphi %s887_s14, %s1085_s14   ;;  %s830_s13 = sphi %s885_s13, %s1084_s13   ;;  %s826_s12 = sphi %s883_s12, %s1083_s12   ;;  %s822_s11 = sphi %s881_s11, %s1082_s11   ;;  %s818_s10 = sphi %s879_s10, %s1081_s10   ;;  %s814_s9 = sphi %s877_s9, %s1080_s9  }
   0x6   : > { %s24_s19 = sadd.s32 1, %s834_s14  ;;  %s27_s20 = sadd.s32 1, %s838_s15 }
   0x7   : > { %p25_p0 = scmp.ge.s32.totalorder %s24_s19, 2  ;;  %p74_p1 = scmp.ne.s32.totalorder %s822_s11, %s818_s10 }
   0x8   : > { %p75_p2 = scmp.eq.s32.totalorder %s559_s17, 3  ;;  %p80_p4 = scmp.ne.s32.totalorder %s818_s10, %s814_s9 }
   0x9   : > { %s1088_s19 = smov (%p25_p0, %s24_s19), 0  ;;  %s1090_s20 = smov (!%p25_p0, %s27_s20), %s838_s15 }
   0xa   : > { %p926_p3 = por %p75_p2, %p74_p1  ;;  %p29_p5 = scmp.ge.s32.totalorder %s1090_s20, 2 }
   0xb   : > { %p81_p6 = scmp.eq.s32.totalorder %s560_s18, 3  ;;  %p565_p7 = scmp.ge.s32.totalorder %s842_s16, 1 }
   0xc   : > { %p112_p8 = scmp.lt.s32.totalorder %s842_s16, 5  ;;  %s1092_s20 = smov (%p29_p5, %s1090_s20), 0 }
   0xd   : > { %p936_p9 = por %p81_p6, %p80_p4  ;;  %s61_s23 = ssub.s32 %s838_s15, %s1092_s20 }
   0xe   : > { %p113_p10 = pnand %p565_p7, %p112_p8  ;;  %s64_s24 = sadd.s32 1, %s822_s11 }
   0xf   : > { %p62_p11 = scmp.eq.s32.totalorder %s61_s23, 0  ;;  %s131_s26 = sand.u32 (!%p113_p10), 1, %s818_s10  }
  0x10   : > { %116 = sbr.rel (%p113_p10) target bundleno = 1027 (0x403), region = 24  ;;  %s567_s27 = sshll.u32 (!%p113_p10), %s830_s13, 1 }
  0x11   : > { %s944_s25 = scalar_select %p62_p11, %s822_s11, %s64_s24  }
  0x12   : > { %s950_s28 = sshll.u32 (!%p113_p10), %s131_s26, 3  ;;  %s953_s29 = sadd.s32 (!%p113_p10), %s826_s12, %s567_s27 }
  0x13   : > { %s568_s30 = sshll.u32 (!%p113_p10), %s953_s29, 1  ;;  %s133_s7 = scalar_lea.vmem (!%p113_p10), [#allocation5], %s950_s28 }
  0x14   : > { %p137_p12 = scmp.lt.s32.totalorder (!%p113_p10), %s568_s30, 7  ;;  %p570_p13 = scmp.ne.s32.totalorder (!%p113_p10), %s826_s12, 0 }
  0x16   : > { %s1094_s30 = smov (!%p137_p12, %s568_s30), 7  ;;  %147 = sbr.rel (%p570_p13) target bundleno = 207 (0xcf), region = 28 }
  0x17   : > { %s569_s3 = sshll.u32 %s1094_s30, 3 }
  0x18   : > { %s959_s6 = scalar_lea.vmem %s1076_s1, %s569_s3 }
  0x1b   : > { %v181_v0 = vld [vmem:[%s1075_s0] sm:$0xff]  ;;  %v183_v1 = vld [vmem:[%s1075_s0 + $0x8] sm:$0xff]  ;;  %v185_v2 = vld [vmem:[%s1075_s0 + $0x10] sm:$0xff] }
  0x1c   : > { %182 = vst [vmem:[#allocation3] sm:$0xff] %v181_v0  ;;  %184 = vst [vmem:[#allocation3 + $0x8] sm:$0xff] %v183_v1  ;;  %v187_v3 = vld [vmem:[%s1075_s0 + $0x18] sm:$0xff]  ;;  %v189_v4 = vld [vmem:[%s1075_s0 + $0x20] sm:$0xff] }
  0x1d   : > { %186 = vst [vmem:[#allocation3 + $0x10] sm:$0xff] %v185_v2  ;;  %v191_v5 = vld [vmem:[%s1075_s0 + $0x28] sm:$0xff]  ;;  %188 = vst [vmem:[#allocation3 + $0x18] sm:$0xff] %v187_v3  ;;  %v193_v6 = vld [vmem:[%s1075_s0 + $0x30] sm:$0xff] }
  0x1e   : > { %190 = vst [vmem:[#allocation3 + $0x20] sm:$0xff] %v189_v4  ;;  %192 = vst [vmem:[#allocation3 + $0x28] sm:$0xff] %v191_v5  ;;  %v195_v7 = vld [vmem:[%s1075_s0 + $0x38] sm:$0xff] }
  0x1f   : > { %194 = vst [vmem:[#allocation3 + $0x30] sm:$0xff] %v193_v6  ;;  %196 = vst [vmem:[#allocation3 + $0x38] sm:$0xff] %v195_v7 }
  0x20   : > { %204 = vsyncadd [#allocation4], 1024 }
  0x21   : > { %806 = dma.done.wait [#allocation4], 1024 }
  0x22   : > { %807 = vsyncadd [#allocation4], 4294966272  ;;  %s987_s30 = smov 0  }
  0x23 LB: >> { %s571_s3 = sshll.u32 %s846_s30, 4  ;;  %vm220_vm0 = vcmask 261120   ;;  %s213_s30 = sadd.s32 1, %s846_s30   ;;  %s846_s30 = sphi %s987_s30, %s213_s30  }
  0x24   : >> { %s215_s4 = scalar_lea.vmem [#allocation3], %s571_s3  ;;  %p210_p0 = scmp.ge.s32.totalorder %s213_s30, 4  }
  0x25   : > { %s860_s5 = smov (%p210_p0), 0.0  }
  0x26   : >> { %v216_v8 = vld [vmem:[%s215_s4] sm:$0xff]  ;;  %v217_v9 = vld [vmem:[%s215_s4 + $0x8] sm:$0xff]  ;;  %238 = sst [smem:[#allocation2]] (%p210_p0), %s860_s5 }
  0x27   : >> { %v218_v10 = vmul.f32 %v216_v8, %v216_v8  ;;  %v219_v11 = vmul.f32 %v217_v9, %v217_v9 }
  0x29   : >> { %v221_v12 = vsel %vm220_vm0, %v218_v10, 0.0  ;;  %v224_v13 = vsel %vm220_vm0, %v219_v11, 0.0 }
  0x2a   : >> { %222 = vadd.xlane.f32.xlu0 %v221_v12 }
  0x2e   : >> { %225 = vadd.xlane.f32.xlu0 %v224_v13 }
  0xb3   : >> { %v223_v14 = vpop.xlane.xlu0 %222 }
  0xb4   : >> { %v227_v15 = vmax.f32 %v223_v14, 1e-24 }
  0xb6   : >> { %712 = vrsqrt.f32 %v227_v15 }
  0xb7   : >> { %v226_v16 = vpop.xlane.xlu0 %225 }
  0xb8   : >> { %v228_v17 = vmax.f32 %v226_v16, 1e-24 }
  0xba   : >> { %714 = vrsqrt.f32 %v228_v17 }
  0xc3   : >> { %v713_v18 = vpop.eup %712 }
  0xc4   : >> { %v231_v19 = vmul.f32 2.0, %v713_v18 }
  0xc6   : >> { %v233_v20 = vmul.f32 %v231_v19, %v216_v8 }
  0xc7   : >> { %v715_v21 = vpop.eup %714 }
  0xc8   : >> { %235 = vst.msk [vmem:[%s215_s4] sm:$0xff] %vm220_vm0, %v233_v20  ;;  %v232_v22 = vmul.f32 2.0, %v715_v21 }
  0xca   : >> { %v234_v23 = vmul.f32 %v232_v22, %v217_v9  ;;  %212 = sbr.rel (!%p210_p0) target bundleno = 35 (0x23), region = 128 }
  0xcc   : >> { %236 = vst.msk [vmem:[%s215_s4 + $0x8] sm:$0xff] %vm220_vm0, %v234_v23 }
  0xcf PF: > { %v239_v24 = vld [vmem:[%s959_s6] sm:$0xff]  ;;  %vm243_vm1 = vcmask 261120   ;;  %v240_v25 = vld [vmem:[%s959_s6 + $0x8] sm:$0xff]  ;;  %v848_v38 = vmov 0.0   ;;  %v852_v39 = vmov 0.0   ;;  %s1000_s6 = smov 0  }
  0xd0   : > { %v241_v26 = vmul.f32 %v239_v24, %v239_v24  ;;  %v242_v27 = vmul.f32 %v240_v25, %v240_v25 }
  0xd2   : > { %v244_v28 = vsel %vm243_vm1, %v241_v26, 0.0  ;;  %v247_v29 = vsel %vm243_vm1, %v242_v27, 0.0 }
  0xd3   : > { %245 = vadd.xlane.f32.xlu0 %v244_v28 }
  0xd7   : > { %248 = vadd.xlane.f32.xlu0 %v247_v29 }
 0x15c   : > { %v246_v30 = vpop.xlane.xlu0 %245 }
 0x15d   : > { %v250_v31 = vmax.f32 %v246_v30, 1e-24 }
 0x15f   : > { %716 = vrsqrt.f32 %v250_v31 }
 0x160   : > { %v249_v32 = vpop.xlane.xlu0 %248 }
 0x161   : > { %v251_v33 = vmax.f32 %v249_v32, 1e-24 }
 0x163   : > { %718 = vrsqrt.f32 %v251_v33 }
 0x16c   : > { %v717_v34 = vpop.eup %716 }
 0x16d   : > { %v254_v35 = vmul.f32 %v717_v34, %v239_v24 }
 0x170   : > { %v719_v36 = vpop.eup %718 }
 0x171   : > { %v255_v37 = vmul.f32 %v719_v36, %v240_v25 }
 0x172 LB: >> { %603 = vmatprep.mubr.msk.f32.mxu0 %vm243_vm1, %v254_v35  ;;  %s572_s8 = sshll.u32 %s858_s6, 5  ;;  %s261_s6 = sadd.s32 1, %s858_s6   ;;  %s858_s6 = sphi %s1000_s6, %s261_s6   ;;  %v854_v39 = vphi %v852_v39, %v853_v39   ;;  %v850_v38 = vphi %v848_v38, %v849_v38  }
 0x173   : >> { %s265_s17 = scalar_lea.vmem [#allocation3], %s572_s8  ;;  %p258_p1 = scmp.ge.s32.totalorder %s261_s6, 2  }
 0x174   : >> { %v269_v40 = vld [vmem:[%s265_s17 + $0x18] sm:$0xff]  ;;  %v268_v41 = vld [vmem:[%s265_s17 + $0x10] sm:$0xff]  ;;  %v267_v42 = vld [vmem:[%s265_s17 + $0x8] sm:$0xff]  ;;  %s580_s18 = sshll.u32 (%p258_p1), %s953_s29, 4  ;;  %v397_v8 = vlaneseq (%p258_p1)  ;;  %vm414_vm4 = vcmask (%p258_p1), 7168   ;;  %s413_s29 = sld [smem:[#allocation2]] (%p258_p1) }
 0x175   : >> { %595 = vmatprep.subr.msk.mxu0 %vm243_vm1, %v269_v40  ;;  %v266_v43 = vld [vmem:[%s265_s17] sm:$0xff]  ;;  %s378_s23 = scalar_lea.vmem (%p258_p1), [#allocation3], %s580_s18  ;;  %v400_v10 = vstv (%p258_p1), %s580_s18  ;;  %p583_p2 = scmp.ne.s32.totalorder (%p258_p1), %s826_s12, 1 }
 0x176   : >> { %596 = vmatpush3.xpose.msk.msra.mxu0 %vm243_vm1, %v269_v40  ;;  %v379_v56 = vld [vmem:[%s378_s23] sm:$0xff] (%p258_p1)  ;;  %v380_v57 = vld [vmem:[%s378_s23 + $0x8] sm:$0xff] (%p258_p1)  ;;  %v398_v9 = vshrl.u32 (%p258_p1), %v397_v8, 7 }
 0x177   : >> { %597 = vmatprep.subr.msk.mxu0 %vm243_vm1, %v268_v41  ;;  %v381_v58 = vmul.f32 (%p258_p1), %v379_v56, %v254_v35  ;;  %v382_v59 = vmul.f32 (%p258_p1), %v380_v57, %v255_v37 }
 0x178   : > { %v399_v11 = vadd.s32 (%p258_p1), 8, %v398_v9  ;;  %v401_v13 = vadd.s32 (%p258_p1), %v400_v10, %v398_v9 }
 0x179   : > { %v383_v60 = vsel (%p258_p1), %vm243_vm1, %v381_v58, 0.0  ;;  %v386_v61 = vsel (%p258_p1), %vm243_vm1, %v382_v59, 0.0 }
 0x17a   : >> { %598 = vmatpush3.xpose.msk.msra.mxu0 %vm243_vm1, %v268_v41  ;;  %v402_v15 = vadd.s32 (%p258_p1), %v400_v10, %v399_v11  ;;  %vm403_vm2 = vcmp.lt.s32.totalorder (%p258_p1), %v401_v13, 60 }
 0x17b   : >> { %599 = vmatprep.subr.msk.mxu0 %vm243_vm1, %v267_v42 }
 0x17c   : > { %vm404_vm3 = vcmp.lt.s32.totalorder (%p258_p1), %v402_v15, 60 }
 0x17e   : >> { %600 = vmatpush3.xpose.msk.msra.mxu0 %vm243_vm1, %v267_v42 }
 0x17f   : >> { %601 = vmatprep.subr.msk.mxu0 %vm243_vm1, %v266_v43 }
 0x182   : >> { %602 = vmatpush3.xpose.msk.msra.mxu0 %vm243_vm1, %v266_v43 }
 0x185   : >> { %604 = vmatmul.mubr.msk.f32.vlgmr.msra.gmra.mxu0 %vm243_vm1, %v255_v37 }
 0x245   : >> { %v605_v44 = vpop.f32.mrf.mxu0 }
 0x246   : >> { %v365_v46 = vmul.f32 1.442695, %v605_v44 }
 0x247   : >> { %v354_v45 = vpop.f32.mrf.mxu0 }
 0x248   : >> { %v363_v47 = vmul.f32 1.442695, %v354_v45 }
 0x24a   : >> { %720 = vpow2.f32 %v363_v47 }
 0x24b   : >> { %722 = vpow2.f32 %v365_v46 }
 0x257   : >> { %v721_v48 = vpop.eup %720 }
 0x258   : >> { %v367_v49 = vsel %vm243_vm1, %v721_v48, 0.0  ;;  %v723_v50 = vpop.eup %722 }
 0x259   : >> { %368 = vadd.xlane.f32.xlu0 %v367_v49  ;;  %v370_v51 = vsel %vm243_vm1, %v723_v50, 0.0 }
 0x25d   : >> { %371 = vadd.xlane.f32.xlu0 %v370_v51 }
 0x261   : > { %384 = vadd.xlane.f32.xlu0 (%p258_p1), %v383_v60 }
 0x265   : > { %387 = vadd.xlane.f32.xlu0 (%p258_p1), %v386_v61 }
 0x2e2   : >> { %v369_v52 = vpop.xlane.xlu0 %368 }
 0x2e3   : >> { %v373_v53 = vadd.f32 %v854_v39, %v369_v52  }
 0x2e5   : >> { %v853_v39 = vmov %v373_v53   ;;  %260 = sbr.rel (!%p258_p1) target bundleno = 370 (0x172), region = 139 }
 0x2e6   : >> { %v372_v54 = vpop.xlane.xlu0 %371 }
 0x2e7   : >> { %v374_v55 = vadd.f32 %v850_v38, %v372_v54  }
 0x2e9   : >> { %v849_v38 = vmov %v374_v55  }
 0x2ea   : > { %v385_v62 = vpop.xlane.xlu0 %384 }
 0x2eb   : > { %v389_v63 = vmul.f32 1.442695, %v385_v62 }
 0x2ed   : > { %724 = vpow2.f32 %v389_v63 }
 0x2ee   : > { %v388_v0 = vpop.xlane.xlu0 %387 }
 0x2ef   : > { %v391_v1 = vmul.f32 1.442695, %v388_v0 }
 0x2f1   : > { %726 = vpow2.f32 %v391_v1 }
 0x2fa   : > { %v725_v2 = vpop.eup %724 }
 0x2fb   : > { %v393_v3 = vsub.f32 %v373_v53, %v725_v2 }
 0x2fd   : > { %v581_v4 = vadd.f32 -4.0, %v393_v3 }
 0x2fe   : > { %v727_v5 = vpop.eup %726 }
 0x2ff   : > { %728 = vlog2.f32 %v581_v4  ;;  %v394_v6 = vsub.f32 %v374_v55, %v727_v5 }
 0x301   : > { %v582_v7 = vadd.f32 -4.0, %v394_v6 }
 0x303   : > { %730 = vlog2.f32 %v582_v7 }
 0x30c   : > { %v729_v12 = vpop.eup %728 }
 0x30d   : > { %v406_v14 = vmul.f32 0.6931472, %v729_v12 }
 0x30f   : > { %v409_v16 = vsub.f32 %v385_v62, %v406_v14 }
 0x310   : > { %v731_v17 = vpop.eup %730 }
 0x311   : > { %v408_v18 = vmul.f32 0.6931472, %v731_v17  ;;  %v411_v20 = vsel %vm403_vm2, %v409_v16, 0.0 }
 0x312   : > { %v415_v22 = vsel %vm414_vm4, %v411_v20, 0.0 }
 0x313   : > { %v410_v19 = vsub.f32 %v388_v0, %v408_v18 }
 0x315   : > { %v412_v21 = vsel %vm404_vm3, %v410_v19, 0.0 }
 0x316   : > { %v416_v23 = vsel %vm414_vm4, %v412_v21, 0.0 }
 0x317   : > { %v417_v24 = vadd.f32 %v416_v23, %v415_v22 }
 0x319   : > { %418 = vadd.xlane.f32.xlu1 %v417_v24 }
 0x3a2   : > { %v419_v25 = vpop.xlane.xlu1 %418 }
 0x3a3   : > { %v420_v26 = vrot.slane %v419_v25, 4 }
 0x3a5   : > { %v421_v27 = vadd.f32 %v420_v26, %v419_v25 }
 0x3a7   : > { %v422_v28 = vrot.slane %v421_v27, 2 }
 0x3a9   : > { %v423_v29 = vadd.f32 %v422_v28, %v421_v27 }
 0x3ab   : > { %v424_v30 = vrot.slane %v423_v29, 1 }
 0x3ad   : > { %v425_v31 = vadd.f32 %v424_v30, %v423_v29 }
 0x3af   : > { %606 = vpush %v425_v31 }
 0x3df   : > { %433 = sbr.rel (%p583_p2) target bundleno = 1004 (0x3ec), region = 80 }
 0x3e0   : > { %s607_s24 = spop %606 }
 0x3e1   : > { %s427_s27 = sadd.f32 %s607_s24, %s413_s29 }
 0x3e3   : > { %429 = sst [smem:[#allocation2]] %s427_s27 }
 0x3e4   : > { %s434_s30 = sld [smem:[#allocation2]] }
 0x3ea   : > { %v435_v32 = vstv %s434_s30 }
 0x3eb   : > { %436 = vst [vmem:[%s133_s7] sm:$0xff] %v435_v32 }
 0x3ec PF: > { %s585_s3 = sshll.u32 %s830_s13, 7  ;;  %s451_s8 = sshll.u32 %s133_s7, 4  ;;  %s452_s8 = int_to_ptr.vmem [resolvable:$true] %s451_s8 }
 0x3ed   : > { %s449_s6 = scalar_lea.hbm %s1077_s2, %s585_s3  ;;  %s438_s12 = scalar_lea.sflag [#allocation6], %s131_s26 }
 0x3ee   : > { %s732_s17 = scalar_lea.vmem %s452_s8, 128  ;;  %s861_s18 = smov [#allocation5]  }
 0x3ef   : > { %p733_p4 = scmp.ne.s32.totalorder %s452_s8, %s732_s17  ;;  %s736_s23 = sshll.u32 %s861_s18, 4  ;;  %s737_s23 = int_to_ptr.vmem [resolvable:$false] %s736_s23 }
 0x3f0   : > { %s738_s29 = scalar_lea.vmem %s737_s23, 256  ;;  %p739_p7 = scmp.lt.s32.totalorder %s452_s8, %s737_s23 }
 0x3f1   : > { %p734_p5 = pnand %p733_p4, %p926_p3  ;;  %p740_p8 = scmp.lt.s32.totalorder %s738_s29, %s732_s17 }
 0x3f3   : > { %p735_p6 = pneg %p734_p5  ;;  %p741_p10 = por %p740_p8, %p739_p7 }
 0x3f5   : > { %p742_p11 = pnand %p741_p10, %p735_p6 }
 0x3f7   : > { %745 = shalt.err (!%p742_p11)
}
 0x3f8   : > { %s746_s13 = scalar_lea.hbm %s449_s6, 128  ;;  %s750_s7 = scalar_lea.hbm %s1077_s2, 256 }
 0x3f9   : > { %p747_p12 = scmp.ne.s32.totalorder %s449_s6, %s746_s13  ;;  %p751_p1 = scmp.lt.s32.totalorder %s449_s6, %s1077_s2 }
 0x3fa   : > { %p752_p2 = scmp.lt.s32.totalorder %s750_s7, %s746_s13 }
 0x3fb   : > { %p748_p13 = pnand %p747_p12, %p926_p3 }
 0x3fc   : > { %p753_p4 = por %p752_p2, %p751_p1 }
 0x3fd   : > { %p749_p0 = pneg %p748_p13 }
 0x3ff   : > { %p754_p5 = pnand %p753_p4, %p749_p0 }
 0x401   : > { %757 = shalt.err (!%p754_p5)
}
 0x402   : > { %608 = dma.vmem_to_hbm [thread:$0]  (%p926_p3), %s452_s8, 128, %s449_s6, %s438_s12  }
 0x403 PF: > { %p614_p6 = scmp.ge.s32.totalorder %s842_s16, 2  ;;  %s463_s30 = sand.u32 1, %s814_s9  }
 0x404   : > { %s464_s3 = scalar_lea.sflag [#allocation6], %s463_s30 }
 0x405   : > { %p611_p7 = pnand %p614_p6, %p936_p9 }
 0x407   : > { %p612_p8 = pneg %p611_p7 }
 0x409   : > { %809 = dma.done.wait (%p612_p8), %s464_s3, 128  }
 0x40a   : > { %811 = vsyncadd (%p612_p8), %s464_s3, 4294967168  ;;  %s15_s16 = sadd.s32 1, %s842_s16   ;;  %s1080_s9 = smov %s818_s10 }
 0x40b   : > { %p12_p10 = scmp.ge.s32.totalorder %s15_s16, 6   ;;  %s1081_s10 = smov %s822_s11 }
 0x40c   : > { %s1082_s11 = smov %s944_s25  ;;  %s1083_s12 = smov %s834_s14 }
 0x40d   : > { %s1084_s13 = smov %s838_s15  ;;  %s1085_s14 = smov %s1088_s19 }
 0x40e   : > { %s1086_s15 = smov %s1092_s20  ;;  %14 = sbr.rel (!%p12_p10) target bundleno = 5 (0x5), region = 150 }
 0x413   :  { %469 = vsyncpa [#allocation6], 1 }
 0x414   :  { %471 = vsyncpa [#allocation6 + $0x1], 1 }
 0x415   :  { %472 = vsyncmov [#allocation4] }
 0x418   :  { %s473_s21 = vpop.sfrf %472 }
 0x419   :  { %p588_p3 = scmp.ne.s32.totalorder %s473_s21, 0 }
 0x41b   :  { %477 = shalt.err (%p588_p3)  }

</bundles_post_ra>
